<compile_context>
chip_gen: v7x
topology: tpu7x:2x2x1
jax: 0.10.0
libtpu: 0.0.40
codegen_flags: <defaults>
</compile_context>

<pallas_src>
import functools
import math

import jax
import jax.numpy as jnp
from jax.experimental import pallas as pl
from jax.experimental.pallas import tpu as pltpu


# --------------------------------------------------------------------------
# Kernel
# --------------------------------------------------------------------------
def _nonlocal_kernel(xr_ref, a_ref, b_ref, g_ref, wWtT_ref, shift_ref,
                     o_ref, acc_ref, *, n_valid, mask_keys):
    j = pl.program_id(2)

    @pl.when(j == 0)
    def _():
        acc_ref[...] = jnp.zeros_like(acc_ref)

    bb_n = acc_ref.shape[0]          # batches folded into this block
    tk = b_ref.shape[1]              # key-tile size

    key_mask = None
    if mask_keys:                    # trace-time flag: only compiled if padded
        key_idx = j * tk + jax.lax.broadcasted_iota(jnp.int32, (tk, 1), 0)
        key_mask = key_idx < n_valid

    for bb in range(bb_n):
        # Affinity slab, transposed: fT[k, m] = relu(b[k] + a[m]);
        # 1/N normalization and projection biases are pre-folded into a/b
        # (exact via ReLU positive homogeneity).
        fT = jnp.maximum(b_ref[bb] + a_ref[bb], 0)            # (TK, TM)
        if key_mask is not None:
            fT = jnp.where(key_mask, fT, 0)
        # y^T accumulation (Ci, TM): bf16 MXU operands, f32 accumulate.
        acc_ref[bb] += jnp.dot(g_ref[bb], fT.astype(g_ref.dtype),
                               preferred_element_type=jnp.float32)

    @pl.when(j == pl.num_programs(2) - 1)
    def _():
        # Epilogue: W conv (bias + inference-BN folded) + residual,
        # channels-first so N stays on the lane dim (lane-dense stores).
        for bb in range(bb_n):
            wy = (jnp.dot(wWtT_ref[...], acc_ref[bb],
                          preferred_element_type=jnp.float32)
                  + shift_ref[...])
            o_ref[bb] = (wy + xr_ref[bb].astype(jnp.float32)).astype(o_ref.dtype)


# --------------------------------------------------------------------------
# Wrapper helpers
# --------------------------------------------------------------------------
def _pick_tile(n, pref):
    """Largest multiple of 128 dividing n (n is a multiple of 128), <= pref."""
    if n <= pref:
        return n
    t = (pref // 128) * 128
    while t > 128 and n % t:
        t -= 128
    return t


def _divisors_desc(n):
    return [d for d in range(n, 0, -1) if n % d == 0]


def _vmem_bytes(bb, c, ci, tm, tk, ab_bytes, io_bytes):
    """Rough per-step VMEM footprint (inputs/outputs double-buffered)."""
    streamed = (bb * c * tm * io_bytes            # x row tile (residual)
                + bb * c * tm * io_bytes          # output tile
                + bb * tm * ab_bytes              # a row vector
                + bb * tk * ab_bytes              # b key column
                + bb * ci * tk * 2                # g key tile (bf16)
                + (c * ci + c) * 4)               # W weight + shift
    live = (bb * ci * tm * 4                      # f32 accumulator scratch
            + bb * tk * tm * (ab_bytes + 2))      # affinity slab (+ bf16 view)
    return 2 * streamed + live


def _default_affinity_dtype():
    try:
        kind = jax.devices()[0].device_kind.lower()
    except Exception:
        kind = ""
    # bf16 VALU exists on v6e / v7x; keep f32 slab math elsewhere (e.g. v5e).
    if "v6" in kind or "v7" in kind:
        return jnp.bfloat16
    return jnp.float32


def fold_params(p, n_true):
    """Algebraic folds (exact up to float reassociation)."""
    inv_n = 1.0 / n_true
    wa = (p["wth"] @ p["wct"]).T * inv_n                        # (1, C)
    wb = (p["wph"] @ p["wcp"]).T * inv_n                        # (1, C)
    cab = (p["bth"] @ p["wct"] + p["bph"] @ p["wcp"]) * inv_n   # (1, 1)
    wW_eff = p["wW"] * p["bn_scale"]                            # (Ci, C), BN folded
    shift = (p["bW"] * p["bn_scale"] + p["bn_shift"]).T         # (C, 1)
    return wa, wb, cab, wW_eff.T, shift                         # wWtT is (C, Ci)


# --------------------------------------------------------------------------
# Public entry point
# --------------------------------------------------------------------------
def nonlocal_block(x, params, *, tm=None, tk=None, affinity_dtype=None):
    """x: (B, C, *spatial) float32 (NCDHW-style, like the PyTorch Conv input)."""
    # TODO(synk): sub_sample > 1 (MaxPool on g/phi) not implemented; sub_sample=1 path only.
    B, C = x.shape[0], x.shape[1]
    spatial = x.shape[2:]
    N = int(math.prod(spatial))
    Ci = params["wg"].shape[1]
    if affinity_dtype is None:
        affinity_dtype = _default_affinity_dtype()
    ab_bytes = jnp.dtype(affinity_dtype).itemsize
    io_bytes = jnp.dtype(x.dtype).itemsize

    # channels-first flatten is a free reshape (no HBM transpose round trip).
    x_cf = x.reshape(B, C, N)
    # Pad the flattened spatial axis to a lane multiple; padded key columns
    # are masked inside the kernel, padded rows are sliced off at the end.
    N_pad = ((N + 127) // 128) * 128
    if N_pad != N:
        x_cf = jnp.pad(x_cf, ((0, 0), (0, 0), (0, N_pad - N)))

    TM = tm or _pick_tile(N_pad, 1024)    # row tile: primary HBM-traffic lever
    TK = tk or _pick_tile(N_pad, 512)     # key tile
    assert N_pad % TM == 0 and N_pad % TK == 0

    # ---- projections hoisted out of the kernel (tiny O(B*N*C*Ci) matmuls) ---
    wa, wb, cab, wWtT, shift = fold_params(params, N)
    a_pre = (jnp.einsum('oc,bcn->bon', wa, x_cf)
             + cab.reshape(1, 1, 1)).astype(affinity_dtype)          # (B, 1, Np)
    b_pre = (jnp.einsum('oc,bcn->bon', wb, x_cf)
             .reshape(B, N_pad, 1).astype(affinity_dtype))           # (B, Np, 1)
    g_pre = (jnp.einsum('ci,bcn->bin', params["wg"], x_cf)
             + params["bg"].reshape(1, Ci, 1)).astype(jnp.bfloat16)  # (B, Ci, Np)

    # ---- batch-in-block size: amortize per-step overhead, keep VMEM sane ----
    budget = 24 << 20
    BB = 1
    for d in _divisors_desc(B):
        if _vmem_bytes(d, C, Ci, TM, TK, ab_bytes, io_bytes) <= budget:
            BB = d
            break
    # Keep the parallel grid extent >= 2 so both v7x TensorCores get work.
    if BB == B and B > 1 and (N_pad // TM) < 2:
        BB = _divisors_desc(B)[1]

    est = _vmem_bytes(BB, C, Ci, TM, TK, ab_bytes, io_bytes)
    vmem_limit = int(min(max(int(est * 1.5) + (4 << 20), 24 << 20), 56 << 20))

    grid = (B // BB, N_pad // TM, N_pad // TK)
    kernel = functools.partial(_nonlocal_kernel,
                               n_valid=N, mask_keys=(N_pad != N))

    out = pl.pallas_call(
        kernel,
        out_shape=jax.ShapeDtypeStruct((B, C, N_pad), x.dtype),
        grid=grid,
        in_specs=[
            pl.BlockSpec((BB, C, TM), lambda bg, i, j: (bg, 0, i)),   # x rows (residual)
            pl.BlockSpec((BB, 1, TM), lambda bg, i, j: (bg, 0, i)),   # a (theta fold)
            pl.BlockSpec((BB, TK, 1), lambda bg, i, j: (bg, j, 0)),   # b (phi fold, sublane-major)
            pl.BlockSpec((BB, Ci, TK), lambda bg, i, j: (bg, 0, j)),  # g key tile (bf16)
            pl.BlockSpec((C, Ci), lambda bg, i, j: (0, 0)),           # W (BN folded)
            pl.BlockSpec((C, 1), lambda bg, i, j: (0, 0)),            # shift
        ],
        out_specs=pl.BlockSpec((BB, C, TM), lambda bg, i, j: (bg, 0, i)),
        scratch_shapes=[pltpu.VMEM((BB, Ci, TM), jnp.float32)],       # y^T accumulator
        compiler_params=pltpu.CompilerParams(
            dimension_semantics=("parallel", "parallel", "arbitrary"),
            vmem_limit_bytes=vmem_limit,
        ),
    )(x_cf, a_pre, b_pre, g_pre, wWtT, shift)

    if N_pad != N:
        out = out[:, :, :N]
    return out.reshape(B, C, *spatial)


# --------------------------------------------------------------------------
# Pure-JAX reference and deterministic params
# --------------------------------------------------------------------------
def reference(x, p):
    """Pure-JAX f32 reference mirroring the PyTorch forward (unfolded)."""
    B, C = x.shape[0], x.shape[1]
    spatial = x.shape[2:]
    N = int(math.prod(spatial))
    xf = jnp.transpose(x.reshape(B, C, N), (0, 2, 1))             # (B, N, C)
    g = xf @ p["wg"] + p["bg"]
    th = xf @ p["wth"] + p["bth"]
    ph = xf @ p["wph"] + p["bph"]
    a = th @ p["wct"]                                             # (B, N, 1)
    b = ph @ p["wcp"]                                             # (B, N, 1)
    f = jax.nn.relu(a + jnp.transpose(b, (0, 2, 1))) / N          # (B, N, N)
    y = f @ g                                                     # (B, N, Ci)
    wy = y @ p["wW"] + p["bW"]
    wy = wy * p["bn_scale"] + p["bn_shift"]
    z = wy + xf
    return jnp.transpose(z, (0, 2, 1)).reshape(B, C, *spatial)


def make_params(key, C, Ci):
    """Deterministic parameter init (kaiming-style for conv weights).
    Biases are zero (as in the module); BN affine/running stats get
    non-trivial deterministic values so the full path is exercised
    (the module inits BN gamma/beta to 0, which would zero the W branch)."""
    ks = jax.random.split(key, 8)
    kaiming = lambda k, shape, fan_in: (
        jax.random.normal(k, shape, jnp.float32) * jnp.sqrt(2.0 / fan_in))
    p = {}
    p["wg"] = kaiming(ks[0], (C, Ci), C)      # stored transposed vs torch (Ci,C,1,1,1)
    p["bg"] = jnp.zeros((1, Ci), jnp.float32)
    p["wth"] = kaiming(ks[1], (C, Ci), C)
    p["bth"] = jnp.zeros((1, Ci), jnp.float32)
    p["wph"] = kaiming(ks[2], (C, Ci), C)
    p["bph"] = jnp.zeros((1, Ci), jnp.float32)
    wcp_full = kaiming(ks[3], (2 * Ci, 1), 2 * Ci)   # concat_project (1, 2Ci, 1, 1)
    p["wct"] = wcp_full[:Ci, :]
    p["wcp"] = wcp_full[Ci:, :]
    p["wW"] = kaiming(ks[4], (Ci, C), Ci)
    p["bW"] = jnp.zeros((1, C), jnp.float32)
    # Inference-mode BatchNorm folded into scale/shift.
    # TODO(synk): training-mode BatchNorm (batch statistics) not implemented.
    gamma = 1.0 + 0.1 * jax.random.normal(ks[5], (1, C), jnp.float32)
    beta = 0.1 * jax.random.normal(ks[6], (1, C), jnp.float32)
    run_mean = 0.05 * jax.random.normal(ks[7], (1, C), jnp.float32)
    run_var = jnp.ones((1, C), jnp.float32)
    eps = 1e-5
    scale = gamma / jnp.sqrt(run_var + eps)
    p["bn_scale"] = scale
    p["bn_shift"] = beta - run_mean * scale
    return p


if __name__ == "__main__":
    key = jax.random.PRNGKey(0)
    kx, kp = jax.random.split(key)

    B, C = 2, 8
    Ci = C // 2                           # inter_channels = in_channels // 2
    T, H, W = 8, 4, 4                     # dimension=3 (Conv3d), N = 128
    x = jax.random.normal(kx, (B, C, T, H, W), jnp.float32)
    params = make_params(kp, C, Ci)

    z = jax.block_until_ready(nonlocal_block(x, params))

    z_ref = reference(x, params)
    assert z.shape == x.shape
    # bf16 operands on the dominant matmul (f32 accumulation) -> looser tolerance.
    assert jnp.allclose(z, z_ref, atol=2e-2, rtol=2e-2), "mismatch vs reference"
    print("KERNEL_OK")
</pallas_src>

<mosaic_0001>
module attributes {stable_mosaic.version = 11 : i64} {
  func.func @_nonlocal_kernel(%arg0: i32, %arg1: i32, %arg2: i32, %arg3: memref<1x8x128xf32, #tpu.memory_space<vmem>>, %arg4: memref<1x1x128xf32, #tpu.memory_space<vmem>>, %arg5: memref<1x128x1xf32, #tpu.memory_space<vmem>>, %arg6: memref<1x4x128xbf16, #tpu.memory_space<vmem>>, %arg7: memref<8x4xf32, #tpu.memory_space<vmem>>, %arg8: memref<8x1xf32, #tpu.memory_space<vmem>>, %arg9: memref<1x8x128xf32, #tpu.memory_space<vmem>>, %arg10: memref<1x4x128xf32, #tpu.memory_space<vmem>>) attributes {dimension_semantics = [#tpu.dimension_semantics<parallel>, #tpu.dimension_semantics<parallel>, #tpu.dimension_semantics<arbitrary>], iteration_bounds = array<i64: 2, 1, 1>, scalar_prefetch = 0 : i64, scratch_operands = 1 : i64, tpu.core_type = #tpu.core_type<tc>, window_params = [{transform_indices = @transform_0, window_bounds = array<i64: 1, 8, 128>}, {transform_indices = @transform_1, window_bounds = array<i64: 1, 1, 128>}, {transform_indices = @transform_2, window_bounds = array<i64: 1, 128, 1>}, {transform_indices = @transform_3, window_bounds = array<i64: 1, 4, 128>}, {pipeline_mode = #tpu.pipeline_mode<synchronous>, transform_indices = @transform_4, window_bounds = array<i64: 8, 4>}, {pipeline_mode = #tpu.pipeline_mode<synchronous>, transform_indices = @transform_5, window_bounds = array<i64: 8, 1>}, {transform_indices = @transform_6, window_bounds = array<i64: 1, 8, 128>}]} {
    %c0_i32 = arith.constant 0 : i32
    %0 = arith.cmpi eq, %arg2, %c0_i32 : i32
    %1 = arith.extui %0 : i1 to i32
    %c0_i32_0 = arith.constant 0 : i32
    %2 = arith.cmpi ne, %1, %c0_i32_0 : i32
    scf.if %2 {
      %cst_18 = arith.constant 0.000000e+00 : f32
      %25 = vector.broadcast %cst_18 : f32 to vector<1x4x128xf32>
      %c0_19 = arith.constant 0 : index
      %c0_20 = arith.constant 0 : index
      %c0_21 = arith.constant 0 : index
      %26 = vector.load %arg10[%c0_19, %c0_20, %c0_21] : memref<1x4x128xf32, #tpu.memory_space<vmem>>, vector<1x4x128xf32>
      tpu.vector_store %arg10[%c0_19, %c0_20, %c0_21], %25 {strides = array<i32>} : memref<1x4x128xf32, #tpu.memory_space<vmem>>, vector<1x4x128xf32>,
    } else {
    }
    %c0 = arith.constant 0 : index
    %c0_1 = arith.constant 0 : index
    %c0_2 = arith.constant 0 : index
    %3 = vector.load %arg5[%c0, %c0_1, %c0_2] : memref<1x128x1xf32, #tpu.memory_space<vmem>>, vector<1x128x1xf32>
    %4 = vector.shape_cast %3 : vector<1x128x1xf32> to vector<128x1xf32>
    %c0_3 = arith.constant 0 : index
    %c0_4 = arith.constant 0 : index
    %c0_5 = arith.constant 0 : index
    %5 = vector.load %arg4[%c0_3, %c0_4, %c0_5] : memref<1x1x128xf32, #tpu.memory_space<vmem>>, vector<1x1x128xf32>
    %6 = vector.shape_cast %5 : vector<1x1x128xf32> to vector<1x128xf32>
    %7 = vector.broadcast %4 : vector<128x1xf32> to vector<128x128xf32>
    %8 = vector.broadcast %6 : vector<1x128xf32> to vector<128x128xf32>
    %9 = arith.addf %7, %8 : vector<128x128xf32>
    %cst = arith.constant 0.000000e+00 : f32
    %10 = vector.broadcast %cst : f32 to vector<128x128xf32>
    %11 = arith.maximumf %9, %10 : vector<128x128xf32>
    %c0_6 = arith.constant 0 : index
    %c0_7 = arith.constant 0 : index
    %c0_8 = arith.constant 0 : index
    %12 = vector.load %arg10[%c0_6, %c0_7, %c0_8] : memref<1x4x128xf32, #tpu.memory_space<vmem>>, vector<1x4x128xf32>
    %13 = vector.shape_cast %12 : vector<1x4x128xf32> to vector<4x128xf32>
    %c0_9 = arith.constant 0 : index
    %c0_10 = arith.constant 0 : index
    %c0_11 = arith.constant 0 : index
    %14 = vector.load %arg6[%c0_9, %c0_10, %c0_11] : memref<1x4x128xbf16, #tpu.memory_space<vmem>>, vector<1x4x128xbf16>
    %15 = vector.shape_cast %14 : vector<1x4x128xbf16> to vector<4x128xbf16>
    %16 = arith.truncf %11 : vector<128x128xf32> to vector<128x128xbf16>
    %cst_12 = arith.constant dense<0.000000e+00> : vector<4x128xf32>
    %17 = tpu.matmul %15, %16, %cst_12 {dimension_numbers = #tpu.dot_dimension_numbers<[1], [0], [0], [1], [0, 0, 1, 1], [], []>} : vector<4x128xbf16>, vector<128x128xbf16>, vector<4x128xf32> -> vector<4x128xf32>
    %18 = arith.addf %13, %17 : vector<4x128xf32>
    %c0_13 = arith.constant 0 : index
    %c0_14 = arith.constant 0 : index
    %c0_15 = arith.constant 0 : index
    %19 = vector.load %arg10[%c0_13, %c0_14, %c0_15] : memref<1x4x128xf32, #tpu.memory_space<vmem>>, vector<1x4x128xf32>
    %20 = vector.shape_cast %19 : vector<1x4x128xf32> to vector<4x128xf32>
    %21 = vector.shape_cast %18 : vector<4x128xf32> to vector<1x4x128xf32>
    tpu.vector_store %arg10[%c0_13, %c0_14, %c0_15], %21 {strides = array<i32>} : memref<1x4x128xf32, #tpu.memory_space<vmem>>, vector<1x4x128xf32>,
    %c0_i32_16 = arith.constant 0 : i32
    %22 = arith.cmpi eq, %arg2, %c0_i32_16 : i32
    %23 = arith.extui %22 : i1 to i32
    %c0_i32_17 = arith.constant 0 : i32
    %24 = arith.cmpi ne, %23, %c0_i32_17 : i32
    scf.if %24 {
      %c0_18 = arith.constant 0 : index
      %c0_19 = arith.constant 0 : index
      %25 = vector.load %arg7[%c0_18, %c0_19] : memref<8x4xf32, #tpu.memory_space<vmem>>, vector<8x4xf32>
      %c0_20 = arith.constant 0 : index
      %c0_21 = arith.constant 0 : index
      %c0_22 = arith.constant 0 : index
      %26 = vector.load %arg10[%c0_20, %c0_21, %c0_22] : memref<1x4x128xf32, #tpu.memory_space<vmem>>, vector<1x4x128xf32>
      %27 = vector.shape_cast %26 : vector<1x4x128xf32> to vector<4x128xf32>
      %cst_23 = arith.constant dense<0.000000e+00> : vector<8x128xf32>
      %28 = tpu.matmul %25, %27, %cst_23 {dimension_numbers = #tpu.dot_dimension_numbers<[1], [0], [0], [1], [0, 0, 1, 1], [], []>} : vector<8x4xf32>, vector<4x128xf32>, vector<8x128xf32> -> vector<8x128xf32>
      %c0_24 = arith.constant 0 : index
      %c0_25 = arith.constant 0 : index
      %29 = vector.load %arg8[%c0_24, %c0_25] : memref<8x1xf32, #tpu.memory_space<vmem>>, vector<8x1xf32>
      %30 = vector.broadcast %29 : vector<8x1xf32> to vector<8x128xf32>
      %31 = arith.addf %28, %30 : vector<8x128xf32>
      %c0_26 = arith.constant 0 : index
      %c0_27 = arith.constant 0 : index
      %c0_28 = arith.constant 0 : index
      %32 = vector.load %arg3[%c0_26, %c0_27, %c0_28] : memref<1x8x128xf32, #tpu.memory_space<vmem>>, vector<1x8x128xf32>
      %33 = vector.shape_cast %32 : vector<1x8x128xf32> to vector<8x128xf32>
      %34 = arith.addf %31, %33 : vector<8x128xf32>
      %c0_29 = arith.constant 0 : index
      %c0_30 = arith.constant 0 : index
      %c0_31 = arith.constant 0 : index
      %35 = vector.load %arg9[%c0_29, %c0_30, %c0_31] : memref<1x8x128xf32, #tpu.memory_space<vmem>>, vector<1x8x128xf32>
      %36 = vector.shape_cast %35 : vector<1x8x128xf32> to vector<8x128xf32>
      %37 = vector.shape_cast %34 : vector<8x128xf32> to vector<1x8x128xf32>
      tpu.vector_store %arg9[%c0_29, %c0_30, %c0_31], %37 {strides = array<i32>} : memref<1x8x128xf32, #tpu.memory_space<vmem>>, vector<1x8x128xf32>,
    } else {
    }
    return
  }
  func.func @transform_0(%arg0: i32, %arg1: i32, %arg2: i32) -> (i32, i32, i32) {
    %c0_i32 = arith.constant 0 : i32
    %c0_i32_0 = arith.constant 0 : i32
    return %arg0, %c0_i32, %arg1 : i32, i32, i32
  }
  func.func @transform_1(%arg0: i32, %arg1: i32, %arg2: i32) -> (i32, i32, i32) {
    %c0_i32 = arith.constant 0 : i32
    %c0_i32_0 = arith.constant 0 : i32
    return %arg0, %c0_i32, %arg1 : i32, i32, i32
  }
  func.func @transform_2(%arg0: i32, %arg1: i32, %arg2: i32) -> (i32, i32, i32) {
    %c0_i32 = arith.constant 0 : i32
    %c0_i32_0 = arith.constant 0 : i32
    return %arg0, %arg2, %c0_i32 : i32, i32, i32
  }
  func.func @transform_3(%arg0: i32, %arg1: i32, %arg2: i32) -> (i32, i32, i32) {
    %c0_i32 = arith.constant 0 : i32
    %c0_i32_0 = arith.constant 0 : i32
    return %arg0, %c0_i32, %arg2 : i32, i32, i32
  }
  func.func @transform_4(%arg0: i32, %arg1: i32, %arg2: i32) -> (i32, i32) {
    %c0_i32 = arith.constant 0 : i32
    %c0_i32_0 = arith.constant 0 : i32
    %c0_i32_1 = arith.constant 0 : i32
    return %c0_i32, %c0_i32_0 : i32, i32
  }
  func.func @transform_5(%arg0: i32, %arg1: i32, %arg2: i32) -> (i32, i32) {
    %c0_i32 = arith.constant 0 : i32
    %c0_i32_0 = arith.constant 0 : i32
    %c0_i32_1 = arith.constant 0 : i32
    return %c0_i32, %c0_i32_0 : i32, i32
  }
  func.func @transform_6(%arg0: i32, %arg1: i32, %arg2: i32) -> (i32, i32, i32) {
    %c0_i32 = arith.constant 0 : i32
    %c0_i32_0 = arith.constant 0 : i32
    return %arg0, %c0_i32, %arg1 : i32, i32, i32
  }
}

</mosaic_0001>

<bundles_post_ra>
// kernel: tpu_custom_call.1
= control target key start
LH: loop header
LB: loop body
LE: loop exit
PB: predicated region body
PF: predicated region fallthrough
CT: control target
= control target key end

     0   :  { %11 = vsyncpa [#allocation4], 0  ;;  %s1183_s0 = inlined_call_operand.vmem [shape: f32[2,8,128], index: 0, kind: input, shape index: {}]   ;;  %s1184_s1 = inlined_call_operand.vmem [shape: f32[2,1,128], index: 1, kind: input, shape index: {}]   ;;  %s1185_s2 = inlined_call_operand.vmem [shape: f32[2,128,1], index: 2, kind: input, shape index: {}]   ;;  %s1186_s3 = inlined_call_operand.vmem [shape: bf16[2,4,128], index: 3, kind: input, shape index: {}]   ;;  %s1187_s4 = inlined_call_operand.vmem [shape: f32[8,4], index: 4, kind: input, shape index: {}]   ;;  %s1188_s5 = inlined_call_operand.vmem [shape: f32[8,1], index: 5, kind: input, shape index: {}]   ;;  %s1189_s6 = inlined_call_operand.hbm [shape: f32[2,8,128], index: 6, kind: output, shape index: {}]  }
   0x1   :  { %13 = vsyncpa [#allocation4 + $0x1], 0  ;;  %s1020_s21 = smov 0   ;;  %s1022_s22 = smov 0  }
   0x2   :  { %s1024_s23 = smov 0   ;;  %s1026_s24 = smov 0  }
   0x3   :  { %s1028_s25 = smov 0   ;;  %s1030_s26 = smov 0  }
   0x4 LB: > { %s787_s27 = sadd.s32 4294967295, %s979_s26   ;;  %s788_s28 = sadd.s32 4294967294, %s979_s26   ;;  %s979_s26 = sphi %s1030_s26, %s19_s26   ;;  %s975_s25 = sphi %s1028_s25, %s1196_s25   ;;  %s971_s24 = sphi %s1026_s24, %s1195_s24   ;;  %s967_s23 = sphi %s1024_s23, %s1194_s23   ;;  %s963_s22 = sphi %s1022_s22, %s1193_s22   ;;  %s959_s21 = sphi %s1020_s21, %s1192_s21  }
   0x5   : > { %s38_s29 = sadd.s32 1, %s975_s25  ;;  %s201_s30 = sadd.s32 1, %s967_s23 }
   0x6   : > { %p40_p0 = scmp.ge.s32.totalorder %s38_s29, 2  ;;  %p211_p1 = scmp.ne.s32.totalorder %s967_s23, %s963_s22 }
   0x7   : > { %p212_p2 = scmp.eq.s32.totalorder %s787_s27, 1  ;;  %p217_p3 = scmp.ne.s32.totalorder %s963_s22, %s959_s21 }
   0x8   : > { %s1198_s29 = smov (%p40_p0, %s38_s29), 0  ;;  %p218_p5 = scmp.eq.s32.totalorder %s788_s28, 1 }
   0x9   : > { %p1060_p4 = por %p212_p2, %p211_p1  ;;  %s196_s8 = ssub.s32 %s975_s25, %s1198_s29 }
   0xa   : > { %p791_p6 = scmp.ge.s32.totalorder %s979_s26, 1  ;;  %p199_p7 = scmp.eq.s32.totalorder %s196_s8, 0 }
   0xb   : > { %p1067_p8 = por %p218_p5, %p217_p3  ;;  %p284_p9 = scmp.lt.s32.totalorder %s979_s26, 3 }
   0xc   : > { %s1073_s10 = scalar_select %p199_p7, %s967_s23, %s201_s30  }
   0xd   : > { %p285_p10 = pnand %p791_p6, %p284_p9 }
   0xe   : > { %p338_p11 = scmp.lt.s32.totalorder (!%p285_p10), %s971_s24, 1  ;;  %v981_v0 = vmov (!%p285_p10), 0   ;;  %v982_v9 = vmov (!%p285_p10), 0.0   ;;  %v566_v18 = vld [vmem:[%s1188_s5] sm:$0xff] (!%p285_p10)  ;;  %vm983_vm0 = vmmov (!%p285_p10), 0   ;;  %vm576_vm1 = vcmask (!%p285_p10), 1043456  }
   0xf   : > { %288 = sbr.rel (%p285_p10) target bundleno = 649 (0x289), region = 44  ;;  %900 = vset.pattern.permute.xlu1 (!%p285_p10), %v981_v0  ;;  %899 = vset.pattern.permute.xlu0 (!%p285_p10), %v981_v0  ;;  %373 = vst [vmem:[#allocation2] sm:$0xf] (!%p285_p10), %v982_v9  ;;  %vm572_vm2 = vcmask (!%p285_p10), 31744   ;;  %s335_s14 = sand.u32 (!%p285_p10), 1, %s963_s22  }
  0x10   : > { %816 = vmatprep.subr.bf16.mxu0 (!%p285_p10), %v982_v9  ;;  %836 = vmatprep.subr.mxu1 (!%p285_p10), %v982_v9  ;;  %s792_s16 = sshll.u32 (!%p285_p10), %s335_s14, 3 }
  0x11   : > { %832 = vmatprep.mubr.msk.bf16.mxu0 (!%p285_p10), %vm983_vm0, %v982_v9  ;;  %838 = vmatprep.mubr.msk.f32.mxu1 (!%p285_p10), %vm983_vm0, %v982_v9 }
  0x16   : > { %s1077_s11 = scalar_select %p338_p11, %s971_s24, 1 }
  0x18   : > { %s804_s12 = sshll.u32 %s1077_s11, 7  ;;  %s350_s20 = scalar_lea.vmem %s1184_s1, %s1077_s11 }
  0x19   : > { %s1083_s15 = scalar_lea.vmem %s1185_s2, %s804_s12  ;;  %v797_v20 = vld [vmem:[%s350_s20] ss:$0 sm:$0xff]  ;;  %s796_s27 = sshll.u32 %s1077_s11, 1 }
  0x1a   : > { %v376_v1 = vld [vmem:[%s1083_s15 + $0x10] sm:$0xff]  ;;  %v374_v2 = vld [vmem:[%s1083_s15] sm:$0xff]  ;;  %v377_v3 = vld [vmem:[%s1083_s15 + $0x18] sm:$0xff]  ;;  %s367_s8 = scalar_lea.vmem %s1186_s3, %s796_s27  ;;  %s801_s20 = sshll.u32 %s971_s24, 7 }
  0x1b   : > { %403 = vperm.xlu1 %900, %v376_v1   ;;  %393 = vperm.xlu0 %899, %v374_v2   ;;  %v375_v4 = vld [vmem:[%s1083_s15 + $0x8] sm:$0xff]  ;;  %v378_v6 = vld [vmem:[%s1083_s15 + $0x20] sm:$0xff]  ;;  %v381_v7 = vld [vmem:[%s1083_s15 + $0x38] sm:$0xff]  ;;  %s337_s27 = scalar_lea.vmem [#allocation3], %s792_s16  ;;  %s1136_s12 = scalar_lea.hbm %s1189_s6, %s801_s20 }
  0x1c   : > { %v379_v5 = vld [vmem:[%s1083_s15 + $0x28] sm:$0xff]  ;;  %v380_v8 = vld [vmem:[%s1083_s15 + $0x30] sm:$0xff]  ;;  %v382_v11 = vld [vmem:[%s1083_s15 + $0x40] sm:$0xff]  ;;  %s668_s28 = sshll.u32 %s337_s27, 4  ;;  %s984_s24 = smov [#allocation3]   ;;  %s1138_s28 = int_to_ptr.vmem [resolvable:$true] %s668_s28 }
  0x1d   : > { %v383_v10 = vld [vmem:[%s1083_s15 + $0x48] sm:$0xff]  ;;  %v385_v12 = vld [vmem:[%s1083_s15 + $0x58] sm:$0xff]  ;;  %v384_v13 = vld [vmem:[%s1083_s15 + $0x50] sm:$0xff]  ;;  %s901_s13 = scalar_lea.vmem %s1138_s28, 128 }
  0x1e   : > { %v387_v14 = vld [vmem:[%s1083_s15 + $0x68] sm:$0xff]  ;;  %v386_v15 = vld [vmem:[%s1083_s15 + $0x60] sm:$0xff]  ;;  %v389_v16 = vld [vmem:[%s1083_s15 + $0x78] sm:$0xff]  ;;  %p902_p12 = scmp.ne.s32.totalorder %s1138_s28, %s901_s13 }
  0x1f   : > { %408 = vperm.xlu1 %900, %v377_v3   ;;  %398 = vperm.xlu0 %899, %v375_v4   ;;  %v388_v17 = vld [vmem:[%s1083_s15 + $0x70] sm:$0xff]  ;;  %s793_s15 = sshll.u32 %s1077_s11, 3  ;;  %s654_s11 = scalar_lea.sflag [#allocation4], %s335_s14 }
  0x20   : > { %s344_s19 = scalar_lea.vmem %s1183_s0, %s793_s15  ;;  %p903_p13 = pnand %p902_p12, %p1060_p4 }
  0x21   : > { %s905_s15 = sshll.u32 %s984_s24, 4  ;;  %s906_s15 = int_to_ptr.vmem [resolvable:$false] %s905_s15 }
  0x22   : > { %p904_p0 = pneg %p903_p13  ;;  %s907_s16 = scalar_lea.vmem %s906_s15, 256 }
  0x23   : > { %418 = vperm.xlu1 %900, %v379_v5   ;;  %413 = vperm.xlu0 %899, %v378_v6   ;;  %p908_p1 = scmp.lt.s32.totalorder %s1138_s28, %s906_s15  ;;  %p909_p2 = scmp.lt.s32.totalorder %s907_s16, %s901_s13 }
  0x25   : > { %p910_p3 = por %p909_p2, %p908_p1 }
  0x27   : > { %428 = vperm.xlu1 %900, %v381_v7   ;;  %423 = vperm.xlu0 %899, %v380_v8   ;;  %p911_p5 = pnand %p910_p3, %p904_p0 }
  0x2b   : > { %438 = vperm.xlu1 %900, %v383_v10   ;;  %433 = vperm.xlu0 %899, %v382_v11  }
  0x2f   : > { %448 = vperm.xlu1 %900, %v385_v12   ;;  %443 = vperm.xlu0 %899, %v384_v13   ;;  %v510_v13 = vld [vmem:[%s367_s8] sm:$0x3] }
  0x33   : > { %458 = vperm.xlu1 %900, %v387_v14   ;;  %453 = vperm.xlu0 %899, %v386_v15   ;;  %v509_v14 = vld [vmem:[#allocation2] sm:$0xf] }
  0x37   : > { %468 = vperm.xlu1 %900, %v389_v16   ;;  %463 = vperm.xlu0 %899, %v388_v17  }
  0x3b   : > { %569 = vperm.xlu0 %899, %v566_v18  }
  0x9a   : > { %v404_v19 = vpop.permute.xlu1 %403  ;;  %v394_v21 = vpop.permute.xlu0 %393 }
  0x9b   : > { %v477_v22 = vadd.f32 %v797_v20, %v394_v21  ;;  %v479_v23 = vadd.f32 %v797_v20, %v404_v19 }
  0x9d   : > { %v493_v28 = vmax.f32 %v477_v22, 0.0  ;;  %v495_v30 = vmax.f32 %v479_v23, 0.0  ;;  %v650_v23 = vld [vmem:[%s344_s19] sm:$0xff] }
  0x9e   : > { %v409_v24 = vpop.permute.xlu1 %408  ;;  %v399_v25 = vpop.permute.xlu0 %398 }
  0x9f   : > { %v480_v26 = vadd.f32 %v797_v20, %v409_v24  ;;  %v478_v27 = vadd.f32 %v797_v20, %v399_v25 }
  0xa1   : > { %v494_v29 = vmax.f32 %v478_v27, 0.0  ;;  %v496_v31 = vmax.f32 %v480_v26, 0.0 }
  0xa2   : > { %v419_v32 = vpop.permute.xlu1 %418  ;;  %v414_v33 = vpop.permute.xlu0 %413 }
  0xa3   : > { %v482_v34 = vadd.f32 %v797_v20, %v419_v32  ;;  %v481_v35 = vadd.f32 %v797_v20, %v414_v33  ;;  %v511_v36 = vpack.c.bf16 %v494_v29, %v493_v28  ;;  %v512_v37 = vpack.c.bf16 %v496_v31, %v495_v30 }
  0xa5   : > { %817 = vmatpush3.bf16.msra.mxu0 %v511_v36  ;;  %v498_v40 = vmax.f32 %v482_v34, 0.0  ;;  %v497_v41 = vmax.f32 %v481_v35, 0.0 }
  0xa6   : > { %v429_v38 = vpop.permute.xlu1 %428  ;;  %v424_v39 = vpop.permute.xlu0 %423  ;;  %818 = vmatprep.subr.bf16.mxu0 %v982_v9 }
  0xa7   : > { %v484_v42 = vadd.f32 %v797_v20, %v429_v38  ;;  %v483_v43 = vadd.f32 %v797_v20, %v424_v39  ;;  %v513_v48 = vpack.c.bf16 %v498_v40, %v497_v41 }
  0xa9   : > { %819 = vmatpush3.bf16.msra.mxu0 %v512_v37  ;;  %v500_v44 = vmax.f32 %v484_v42, 0.0  ;;  %v499_v45 = vmax.f32 %v483_v43, 0.0 }
  0xaa   : > { %v439_v46 = vpop.permute.xlu1 %438  ;;  %v434_v47 = vpop.permute.xlu0 %433  ;;  %820 = vmatprep.subr.bf16.mxu0 %v982_v9 }
  0xab   : > { %v486_v49 = vadd.f32 %v797_v20, %v439_v46  ;;  %v485_v50 = vadd.f32 %v797_v20, %v434_v47  ;;  %v514_v51 = vpack.c.bf16 %v500_v44, %v499_v45 }
  0xad   : > { %821 = vmatpush3.bf16.msra.mxu0 %v513_v48  ;;  %v502_v54 = vmax.f32 %v486_v49, 0.0  ;;  %v501_v55 = vmax.f32 %v485_v50, 0.0 }
  0xae   : > { %v449_v52 = vpop.permute.xlu1 %448  ;;  %v444_v53 = vpop.permute.xlu0 %443  ;;  %822 = vmatprep.subr.bf16.mxu0 %v982_v9 }
  0xaf   : > { %v488_v56 = vadd.f32 %v797_v20, %v449_v52  ;;  %v487_v57 = vadd.f32 %v797_v20, %v444_v53  ;;  %v515_v62 = vpack.c.bf16 %v502_v54, %v501_v55 }
  0xb1   : > { %823 = vmatpush3.bf16.msra.mxu0 %v514_v51  ;;  %v504_v58 = vmax.f32 %v488_v56, 0.0  ;;  %v503_v59 = vmax.f32 %v487_v57, 0.0 }
  0xb2   : > { %v459_v60 = vpop.permute.xlu1 %458  ;;  %v454_v61 = vpop.permute.xlu0 %453  ;;  %824 = vmatprep.subr.bf16.mxu0 %v982_v9 }
  0xb3   : > { %v490_v63 = vadd.f32 %v797_v20, %v459_v60  ;;  %v489_v0 = vadd.f32 %v797_v20, %v454_v61  ;;  %v516_v1 = vpack.c.bf16 %v504_v58, %v503_v59 }
  0xb5   : > { %825 = vmatpush3.bf16.msra.mxu0 %v515_v62  ;;  %v506_v4 = vmax.f32 %v490_v63, 0.0  ;;  %v505_v5 = vmax.f32 %v489_v0, 0.0 }
  0xb6   : > { %v469_v2 = vpop.permute.xlu1 %468  ;;  %v464_v3 = vpop.permute.xlu0 %463  ;;  %826 = vmatprep.subr.bf16.mxu0 %v982_v9 }
  0xb7   : > { %v492_v6 = vadd.f32 %v797_v20, %v469_v2  ;;  %v491_v7 = vadd.f32 %v797_v20, %v464_v3  ;;  %v517_v8 = vpack.c.bf16 %v506_v4, %v505_v5 }
  0xb9   : > { %827 = vmatpush3.bf16.msra.mxu0 %v516_v1  ;;  %v508_v10 = vmax.f32 %v492_v6, 0.0  ;;  %v507_v11 = vmax.f32 %v491_v7, 0.0 }
  0xba   : > { %828 = vmatprep.subr.bf16.mxu0 %v982_v9  ;;  %v570_v21 = vpop.permute.xlu0 %569 }
  0xbb   : > { %v518_v12 = vpack.c.bf16 %v508_v10, %v507_v11 }
  0xbd   : > { %829 = vmatpush3.bf16.msra.mxu0 %v517_v8 }
  0xbe   : > { %830 = vmatprep.subr.bf16.mxu0 %v982_v9  ;;  %v564_v9 = vld [vmem:[%s1187_s4] sm:$0xff] }
  0xc1   : > { %831 = vmatpush3.bf16.msra.mxu0 %v518_v12 }
  0xc4   : > { %833 = vmatmul.mubr.bf16.vlgmr.msra.gmra.mrb[0].mxu0 %v510_v13 }
 0x197   : > { %v553_v15 = vpop.f32.mrb[0].mxu0 }
 0x198   : > { %v559_v16 = vadd.f32 %v553_v15, %v509_v14  ;;  %v834_v17 = vpop.f32.mrb[1].mxu0 }
 0x199   : > { %v556_v18 = vpop.f32.mrb[2].mxu0 }
 0x19a   : > { %560 = vst [vmem:[#allocation2] sm:$0xf] %v559_v16  ;;  %v835_v19 = vpop.f32.mrb[3].mxu0 }
 0x1a1   : > { %v565_v20 = vld [vmem:[#allocation2] sm:$0xf] }
 0x1a2   : > { %837 = vmatpush3.msk.msra.mxu1 %vm576_vm1, %v565_v20 }
 0x1a3   : > { %839 = vmatmul.mubr.msk.f32.vlgmr.msra.gmra.mrb[0].mxu1 %vm572_vm2, %v564_v9 }
 0x276   : > { %v646_v22 = vpop.f32.mrb[0].mxu1 }
 0x277   : > { %v647_v24 = vadd.f32 %v646_v22, %v570_v21  ;;  %v840_v25 = vpop.f32.mrb[1].mxu1 }
 0x279   : > { %v651_v26 = vadd.f32 %v650_v23, %v647_v24 }
 0x27b   : > { %652 = vst [vmem:[%s337_s27] sm:$0xff] %v651_v26 }
 0x27c   : > { %914 = shalt.err (!%p911_p5)
}
 0x27d   : > { %s915_s14 = scalar_lea.hbm %s1136_s12, 128  ;;  %s919_s19 = scalar_lea.hbm %s1189_s6, 256 }
 0x27e   : > { %p916_p6 = scmp.ne.s32.totalorder %s1136_s12, %s915_s14  ;;  %p920_p10 = scmp.lt.u32.totalorder %s1136_s12, %s1189_s6 }
 0x27f   : > { %p921_p11 = scmp.lt.u32.totalorder %s919_s19, %s915_s14  ;;  %p923_p13 = scmp.lt.u32.totalorder %s915_s14, %s1136_s12 }
 0x280   : > { %p917_p7 = pnand %p916_p6, %p1060_p4 }
 0x281   : > { %p922_p12 = por %p921_p11, %p920_p10 }
 0x282   : > { %p918_p9 = pneg %p917_p7 }
 0x283   : > { %p924_p0 = por %p923_p13, %p922_p12 }
 0x285   : > { %p925_p1 = pnand %p924_p0, %p918_p9 }
 0x287   : > { %928 = shalt.err (!%p925_p1)
}
 0x288   : > { %841 = dma.vmem_to_hbm [thread:$0]  (%p1060_p4), %s1138_s28, 128, %s1136_s12, %s654_s11  }
 0x289 PF: > { %p847_p2 = scmp.ge.s32.totalorder %s979_s26, 2  ;;  %s680_s30 = sand.u32 1, %s959_s21  }
 0x28a   : > { %s681_s8 = scalar_lea.sflag [#allocation4], %s680_s30 }
 0x28b   : > { %p844_p3 = pnand %p847_p2, %p1067_p8 }
 0x28d   : > { %954 = dma.done.wait (!%p844_p3), %s681_s8, 128  }
 0x28e   : > { %956 = vsyncadd (!%p844_p3), %s681_s8, 4294967168  ;;  %s19_s26 = sadd.s32 1, %s979_s26   ;;  %s1192_s21 = smov %s963_s22 }
 0x28f   : > { %p16_p5 = scmp.ge.s32.totalorder %s19_s26, 4   ;;  %s1193_s22 = smov %s967_s23 }
 0x290   : > { %s1194_s23 = smov %s1073_s10  ;;  %s1195_s24 = smov %s975_s25 }
 0x291   : > { %s1196_s25 = smov %s1198_s29  ;;  %18 = sbr.rel (!%p16_p5) target bundleno = 4 (0x4), region = 96 }
 0x298   :  { %686 = vsyncpa [#allocation4], 1 }
 0x299   :  { %688 = vsyncpa [#allocation4 + $0x1], 1 }

</bundles_post_ra>
